<compile_context>
chip_gen: v6e
topology: v6e:2x2x1
jax: 0.10.0
libtpu: 0.0.40
codegen_flags: <defaults>
</compile_context>

<pallas_src>
import math
import jax
import jax.numpy as jnp
from jax.experimental import pallas as pl
from jax.experimental.pallas import tpu as pltpu


def _round_up(x, m):
    return ((x + m - 1) // m) * m


def _value_kernel(x_ref, w_ref, b_ref, o_ref):
    # x_ref: [TM, F] VMEM   w_ref: [1, F] VMEM   b_ref: [1] SMEM   o_ref: [TM, 1]
    x = x_ref[...].astype(jnp.float32)
    w = w_ref[...].astype(jnp.float32)          # broadcasts [1, F] over rows (VPU)
    acc = jnp.sum(x * w, axis=-1, keepdims=True)  # XLU cross-lane reduce -> [TM, 1]
    o_ref[...] = (acc + b_ref[0]).astype(o_ref.dtype)


def _choose_tile_rows(batch, n_features, itemsize=4,
                      tile_bytes_budget=8 * 1024 * 1024):
    """Rows per grid step: multiple of 8, capped so the double-buffered
    (TM, F) input tile stays far below VMEM on every generation (incl. v7x)."""
    max_rows_by_vmem = max(8, tile_bytes_budget // (2 * itemsize * max(n_features, 1)))
    tm = min(1024, max_rows_by_vmem, _round_up(batch, 8))
    return max(8, (tm // 8) * 8)


def value_network_forward(features, weight, bias):
    """features: [B, F]; weight: [1, F] (PyTorch nn.Linear layout); bias: [1]."""
    B, F = features.shape
    assert weight.shape == (1, F), weight.shape
    dtype = features.dtype
    itemsize = jnp.dtype(dtype).itemsize

    tm = _choose_tile_rows(B, F, itemsize)
    b_pad = _round_up(B, tm)
    x = features
    if b_pad != B:
        x = jnp.pad(x, ((0, b_pad - B), (0, 0)))

    bias_smem = bias.reshape((1,)).astype(jnp.float32)

    cost = pl.CostEstimate(
        flops=2 * b_pad * F,
        transcendentals=0,
        bytes_accessed=(b_pad * F + F + b_pad) * itemsize,
    )

    out = pl.pallas_call(
        _value_kernel,
        out_shape=jax.ShapeDtypeStruct((b_pad, 1), dtype),
        grid_spec=pltpu.PrefetchScalarGridSpec(
            num_scalar_prefetch=0,
            grid=(b_pad // tm,),
            in_specs=[
                pl.BlockSpec((tm, F), lambda i: (i, 0)),              # x: batch-tiled
                pl.BlockSpec((1, F), lambda i: (0, 0)),               # weight: resident
                pl.BlockSpec(memory_space=pltpu.MemorySpace.SMEM),    # bias scalar
            ],
            out_specs=pl.BlockSpec((tm, 1), lambda i: (i, 0)),
        ),
        compiler_params=pltpu.CompilerParams(
            dimension_semantics=("parallel",),          # tiles independent; v7x 2 TCs
            vmem_limit_bytes=32 * 1024 * 1024,
        ),
        cost_estimate=cost,
    )(x, weight, bias_smem)

    return out[:B]


def init_value_network_params(key, n_features):
    """Matches the PyTorch module: xavier_uniform_ on weight [1, n_features],
    zero bias [1]."""
    fan_in, fan_out = n_features, 1
    bound = math.sqrt(6.0 / (fan_in + fan_out))
    weight = jax.random.uniform(
        key, (1, n_features), dtype=jnp.float32, minval=-bound, maxval=bound
    )
    bias = jnp.zeros((1,), dtype=jnp.float32)
    return weight, bias


if __name__ == "__main__":
    key = jax.random.PRNGKey(0)
    k_x, k_w, k_x2 = jax.random.split(key, 3)

    n_features = 32
    weight, bias = init_value_network_params(k_w, n_features)

    # Small case consistent with the module (batch=2, hidden=32).
    batch = 2
    features = jax.random.normal(k_x, (batch, n_features), dtype=jnp.float32)
    out = jax.block_until_ready(value_network_forward(features, weight, bias))
    ref = features @ weight.T + bias
    assert out.shape == (batch, 1)
    assert jnp.allclose(out, ref, atol=1e-5, rtol=1e-5)

    # Larger batch to exercise the multi-tile grid + tail padding path.
    batch2 = 2600  # > TM(=1024) and not a multiple of the tile
    features2 = jax.random.normal(k_x2, (batch2, n_features), dtype=jnp.float32)
    out2 = jax.block_until_ready(value_network_forward(features2, weight, bias))
    ref2 = features2 @ weight.T + bias
    assert out2.shape == (batch2, 1)
    assert jnp.allclose(out2, ref2, atol=1e-5, rtol=1e-5)

    print("KERNEL_OK")
</pallas_src>

<mosaic_0001>
module attributes {stable_mosaic.version = 11 : i64} {
  func.func @_value_kernel(%arg0: i32, %arg1: memref<8x32xf32, #tpu.memory_space<vmem>>, %arg2: memref<1x32xf32, #tpu.memory_space<vmem>>, %arg3: memref<1xf32, #tpu.memory_space<smem>>, %arg4: memref<8x1xf32, #tpu.memory_space<vmem>>) attributes {dimension_semantics = [#tpu.dimension_semantics<parallel>], iteration_bounds = array<i64: 1>, scalar_prefetch = 0 : i64, scratch_operands = 0 : i64, tpu.core_type = #tpu.core_type<tc>, window_params = [{transform_indices = @transform_0, window_bounds = array<i64: 8, 32>}, {pipeline_mode = #tpu.pipeline_mode<synchronous>, transform_indices = @transform_1, window_bounds = array<i64: 1, 32>}, {transform_indices = @transform_2, window_bounds = array<i64: 1>}, {transform_indices = @transform_3, window_bounds = array<i64: 8, 1>}]} {
    %c0 = arith.constant 0 : index
    %c0_0 = arith.constant 0 : index
    %0 = vector.load %arg1[%c0, %c0_0] : memref<8x32xf32, #tpu.memory_space<vmem>>, vector<8x32xf32>
    %c0_1 = arith.constant 0 : index
    %c0_2 = arith.constant 0 : index
    %1 = vector.load %arg2[%c0_1, %c0_2] : memref<1x32xf32, #tpu.memory_space<vmem>>, vector<1x32xf32>
    %2 = vector.broadcast %1 : vector<1x32xf32> to vector<8x32xf32>
    %3 = arith.mulf %0, %2 : vector<8x32xf32>
    %cst = arith.constant dense<0.000000e+00> : vector<8xf32>
    %4 = vector.multi_reduction <add>, %3, %cst [1] : vector<8x32xf32> to vector<8xf32>
    %5 = vector.shape_cast %4 : vector<8xf32> to vector<8x1xf32>
    %c0_3 = arith.constant 0 : index
    %6 = memref.load %arg3[%c0_3] : memref<1xf32, #tpu.memory_space<smem>>
    %7 = vector.broadcast %6 : f32 to vector<8x1xf32>
    %8 = arith.addf %5, %7 : vector<8x1xf32>
    %c0_4 = arith.constant 0 : index
    %c0_5 = arith.constant 0 : index
    %9 = vector.load %arg4[%c0_4, %c0_5] : memref<8x1xf32, #tpu.memory_space<vmem>>, vector<8x1xf32>
    tpu.vector_store %arg4[%c0_4, %c0_5], %8 {strides = array<i32>} : memref<8x1xf32, #tpu.memory_space<vmem>>, vector<8x1xf32>,
    return
  }
  func.func @transform_0(%arg0: i32) -> (i32, i32) {
    %c0_i32 = arith.constant 0 : i32
    %c0_i32_0 = arith.constant 0 : i32
    return %arg0, %c0_i32 : i32, i32
  }
  func.func @transform_1(%arg0: i32) -> (i32, i32) {
    %c0_i32 = arith.constant 0 : i32
    %c0_i32_0 = arith.constant 0 : i32
    %c0_i32_1 = arith.constant 0 : i32
    return %c0_i32, %c0_i32_0 : i32, i32
  }
  func.func @transform_2(%arg0: i32) -> i32 {
    %c0_i32 = arith.constant 0 : i32
    %c0_i32_0 = arith.constant 0 : i32
    return %c0_i32 : i32
  }
  func.func @transform_3(%arg0: i32) -> (i32, i32) {
    %c0_i32 = arith.constant 0 : i32
    %c0_i32_0 = arith.constant 0 : i32
    return %arg0, %c0_i32 : i32, i32
  }
}

</mosaic_0001>

<bundles_post_ra>
// kernel: tpu_custom_call.1
= control target key start
LH: loop header
LB: loop body
LE: loop exit
PB: predicated region body
PF: predicated region fallthrough
CT: control target
= control target key end

     0   :  { %9 = vsyncpa [#allocation4], 0  ;;  %s74_s12 = smov [#allocation3]   ;;  %s107_s0 = inlined_call_operand.hbm [shape: f32[8,32], index: 0, kind: input, shape index: {}]   ;;  %s108_s1 = inlined_call_operand.vmem [shape: f32[1,32], index: 1, kind: input, shape index: {}]   ;;  %s109_s2 = inlined_call_operand.<no memory space> [shape: f32[1], index: 2, kind: input, shape index: {}]   ;;  %s110_s3 = inlined_call_operand.vmem [shape: f32[8,1], index: 3, kind: output, shape index: {}]  }
   0x1   :  { %s16_s13 = sshll.u32 %s74_s12, 4  ;;  %s17_s13 = int_to_ptr.vmem [resolvable:$true] %s16_s13 }
   0x2   :  { %s60_s14 = scalar_lea.vmem %s17_s13, 128  ;;  %p65_p1 = scmp.lt.s32.totalorder %s17_s13, %s17_s13 }
   0x3   :  { %p61_p0 = scmp.ne.s32.totalorder %s17_s13, %s60_s14  ;;  %p66_p2 = scmp.lt.s32.totalorder %s60_s14, %s60_s14 }
   0x5   :  { %p67_p3 = por %p66_p2, %p65_p1 }
   0x7   :  { %p68_p4 = pnand %p67_p3, %p61_p0 }
   0x9   :  { %71 = shalt.err (!%p68_p4)
}
   0xa   :  { %19 = dma.hbm_to_vmem [thread:$0]  %s107_s0, 128, %s17_s13, [#allocation4]  }
   0xb   :  { %72 = dma.done.wait [#allocation4], 128  }
   0xc   :  { %73 = vsyncadd [#allocation4], 4294967168  ;;  %v27_v0 = vld [vmem:[#allocation3] sm:$0xff]  ;;  %vm36_vm0 = vcmask 261120   ;;  %v41_v4 = vstv %s109_s2  ;;  %vm43_vm1 = vcmask 7168  }
   0xd   :  { %v50_v1 = vld [vmem:[%s108_s1] ss:$0 sm:$0xff] }
   0xe   :  { %v35_v2 = vmul.f32 %v50_v1, %v27_v0 }
  0x10   :  { %v37_v3 = vsel %vm36_vm0, %v35_v2, 0.0 }
  0x11   :  { %38 = vadd.xlane.f32.xlu0 %v37_v3 }
  0x9a   :  { %v39_v5 = vpop.xlane.xlu0 %38 }
  0x9b   :  { %v42_v6 = vadd.f32 %v41_v4, %v39_v5 }
  0x9d   :  { %44 = vst.msk [vmem:[%s110_s3] sm:$0xff] %vm43_vm1, %v42_v6 }
  0x9e   :  { %49 = vsyncpa [#allocation4], 1 }

</bundles_post_ra>
